<compile_context>
chip_gen: v7x
topology: tpu7x:2x2x1
jax: 0.10.0
libtpu: 0.0.40
codegen_flags: <defaults>
</compile_context>

<pallas_src>
import jax
import jax.numpy as jnp
from jax.experimental import pallas as pl
from jax.experimental.pallas import tpu as pltpu


def _round_up(x, m):
    return ((x + m - 1) // m) * m


def _patch_embed_kernel(x_ref, w_ref, b_ref, o_ref):
    # x_ref: (TM, Kp) bf16 patch tile   (streamed / pipelined over the grid)
    # w_ref: (Kp, Np) bf16 W^T          (whole, resident: constant index_map)
    # b_ref: (1,  Np) f32 bias          (whole, resident)
    # o_ref: (TM, Np) out-dtype tile    (lane-dense stores: Np % 128 == 0)
    acc = jnp.dot(x_ref[...], w_ref[...], preferred_element_type=jnp.float32)
    o_ref[...] = (acc + b_ref[...]).astype(o_ref.dtype)


def patch_embed(x, weight, bias, patch_size, *, block_m=None,
                compute_dtype=jnp.bfloat16):
    """x: (B, C, H, W); weight: (E, C, ph, pw); bias: (E,). Returns (B, P, E)."""
    B, C, H, W = x.shape
    ph, pw = patch_size
    E = weight.shape[0]
    assert H % ph == 0 and W % pw == 0, "image size must be divisible by patch"
    gh, gw = H // ph, W // pw
    num_patches = gh * gw
    out_dtype = x.dtype

    # --- glue: extract non-overlapping patches (== conv with stride=kernel) ---
    # Cast to the MXU compute dtype first so the transpose moves half the bytes.
    # TODO(synk): fuse this gather into the pallas input DMA (NHWC layout or
    # CompilerParams(allow_input_fusion=...)) to avoid materializing a second
    # copy of the activations in HBM.
    xc = x.astype(compute_dtype)
    patches = xc.reshape(B, C, gh, ph, gw, pw).transpose(0, 2, 4, 1, 3, 5)
    patches = patches.reshape(B * num_patches, C * ph * pw)

    M, K = patches.shape
    N = E

    # Pad K/N to lane width (128): full MXU contraction lanes and unmasked
    # (lane-dense) output stores.  Pad M to a multiple of the M tile so there
    # is never a ragged tail tile.
    Kp = _round_up(K, 128)
    Np = _round_up(N, 128)
    if block_m is None:
        # TM=512 keeps the working set well under every generation's scoped
        # VMEM budget even at ViT-B sizes (K=N=768, bf16):
        #   2*TM*Kp*2 + 2*Kp*Np*2 + 2*TM*Np*4 + bias  ~= 7 MiB at TM=512.
        block_m = 512 if M >= 512 else _round_up(M, 8)
    TM = _round_up(min(block_m, _round_up(M, 8)), 8)
    Mp = _round_up(M, TM)

    patches_p = jnp.pad(patches, ((0, Mp - M), (0, Kp - K)))          # (Mp, Kp)
    w_t = weight.reshape(E, K).T.astype(compute_dtype)                # (K,  E)
    w_p = jnp.pad(w_t, ((0, Kp - K), (0, Np - N)))                    # (Kp, Np)
    b_p = jnp.pad(bias.astype(jnp.float32).reshape(1, N),
                  ((0, 0), (0, Np - N)))                              # (1,  Np)

    grid = (Mp // TM,)

    out = pl.pallas_call(
        _patch_embed_kernel,
        out_shape=jax.ShapeDtypeStruct((Mp, Np), out_dtype),
        grid_spec=pltpu.PrefetchScalarGridSpec(
            num_scalar_prefetch=0,
            grid=grid,
            in_specs=[
                pl.BlockSpec((TM, Kp), lambda i: (i, 0)),   # patch tiles stream
                pl.BlockSpec((Kp, Np), lambda i: (0, 0)),   # weight resident
                pl.BlockSpec((1, Np), lambda i: (0, 0)),    # bias resident
            ],
            out_specs=pl.BlockSpec((TM, Np), lambda i: (i, 0)),
        ),
        compiler_params=pltpu.CompilerParams(
            # M axis is fully independent -> sharded across v7x's 2 TensorCores.
            dimension_semantics=("parallel",),
            # Explicit budget: safe on v5e (16 MiB default scoped) and on v7x
            # (64 MiB physical); our working set at TM=512 is ~7 MiB.
            vmem_limit_bytes=32 * 1024 * 1024,
        ),
    )(patches_p, w_p, b_p)

    out = out[:M, :N]
    return out.reshape(B, num_patches, E)


if __name__ == "__main__":
    # Small shapes consistent with the module: img_size=16, patch_size=4,
    # in_chans=4, embed_dim=32 (B=2 -> M = 2*16 = 32 patch rows).
    B, C, H, W = 2, 4, 16, 16
    ph, pw = 4, 4
    E = 32

    key = jax.random.PRNGKey(0)
    kx, kw, kb = jax.random.split(key, 3)
    x = jax.random.normal(kx, (B, C, H, W), dtype=jnp.float32)
    weight = jax.random.normal(kw, (E, C, ph, pw), dtype=jnp.float32) * 0.02
    bias = jax.random.normal(kb, (E,), dtype=jnp.float32) * 0.02

    # block_m=8 forces a multi-step M grid even at this tiny demo size so the
    # tiled / pipelined path is exercised; also run the default heuristic path.
    out_tiled = jax.block_until_ready(
        patch_embed(x, weight, bias, (ph, pw), block_m=8))
    out_default = jax.block_until_ready(
        patch_embed(x, weight, bias, (ph, pw)))

    # Reference: lax conv with stride=kernel (same semantics as nn.Conv2d).
    ref = jax.lax.conv_general_dilated(
        x, weight, window_strides=(ph, pw), padding="VALID",
        dimension_numbers=("NCHW", "OIHW", "NCHW"))
    ref = (ref + bias[None, :, None, None]).reshape(B, E, -1).transpose(0, 2, 1)

    assert out_tiled.shape == (B, (H // ph) * (W // pw), E)
    assert out_tiled.dtype == x.dtype
    # bf16 MXU inputs with f32 accumulation -> loosened tolerance vs f32 ref.
    assert jnp.allclose(out_tiled, ref, atol=3e-2, rtol=3e-2)
    assert jnp.allclose(out_default, ref, atol=3e-2, rtol=3e-2)
    assert jnp.allclose(out_tiled, out_default, atol=1e-5, rtol=1e-5)

    print("KERNEL_OK")
</pallas_src>

<mosaic_0001>
module attributes {stable_mosaic.version = 11 : i64} {
  func.func @_patch_embed_kernel(%arg0: i32, %arg1: memref<8x128xbf16, #tpu.memory_space<vmem>>, %arg2: memref<128x128xbf16, #tpu.memory_space<vmem>>, %arg3: memref<1x128xf32, #tpu.memory_space<vmem>>, %arg4: memref<8x128xf32, #tpu.memory_space<vmem>>) attributes {dimension_semantics = [#tpu.dimension_semantics<parallel>], iteration_bounds = array<i64: 4>, scalar_prefetch = 0 : i64, scratch_operands = 0 : i64, tpu.core_type = #tpu.core_type<tc>, window_params = [{transform_indices = @transform_0, window_bounds = array<i64: 8, 128>}, {pipeline_mode = #tpu.pipeline_mode<synchronous>, transform_indices = @transform_1, window_bounds = array<i64: 128, 128>}, {pipeline_mode = #tpu.pipeline_mode<synchronous>, transform_indices = @transform_2, window_bounds = array<i64: 1, 128>}, {transform_indices = @transform_3, window_bounds = array<i64: 8, 128>}]} {
    %c0 = arith.constant 0 : index
    %c0_0 = arith.constant 0 : index
    %0 = vector.load %arg1[%c0, %c0_0] : memref<8x128xbf16, #tpu.memory_space<vmem>>, vector<8x128xbf16>
    %c0_1 = arith.constant 0 : index
    %c0_2 = arith.constant 0 : index
    %1 = vector.load %arg2[%c0_1, %c0_2] : memref<128x128xbf16, #tpu.memory_space<vmem>>, vector<128x128xbf16>
    %cst = arith.constant dense<0.000000e+00> : vector<8x128xf32>
    %2 = tpu.matmul %0, %1, %cst {dimension_numbers = #tpu.dot_dimension_numbers<[1], [0], [0], [1], [0, 0, 1, 1], [], []>} : vector<8x128xbf16>, vector<128x128xbf16>, vector<8x128xf32> -> vector<8x128xf32>
    %c0_3 = arith.constant 0 : index
    %c0_4 = arith.constant 0 : index
    %3 = vector.load %arg3[%c0_3, %c0_4] : memref<1x128xf32, #tpu.memory_space<vmem>>, vector<1x128xf32>
    %4 = vector.broadcast %3 : vector<1x128xf32> to vector<8x128xf32>
    %5 = arith.addf %2, %4 : vector<8x128xf32>
    %c0_5 = arith.constant 0 : index
    %c0_6 = arith.constant 0 : index
    %6 = vector.load %arg4[%c0_5, %c0_6] : memref<8x128xf32, #tpu.memory_space<vmem>>, vector<8x128xf32>
    tpu.vector_store %arg4[%c0_5, %c0_6], %5 {strides = array<i32>} : memref<8x128xf32, #tpu.memory_space<vmem>>, vector<8x128xf32>,
    return
  }
  func.func @transform_0(%arg0: i32) -> (i32, i32) {
    %c0_i32 = arith.constant 0 : i32
    %c0_i32_0 = arith.constant 0 : i32
    return %arg0, %c0_i32 : i32, i32
  }
  func.func @transform_1(%arg0: i32) -> (i32, i32) {
    %c0_i32 = arith.constant 0 : i32
    %c0_i32_0 = arith.constant 0 : i32
    %c0_i32_1 = arith.constant 0 : i32
    return %c0_i32, %c0_i32_0 : i32, i32
  }
  func.func @transform_2(%arg0: i32) -> (i32, i32) {
    %c0_i32 = arith.constant 0 : i32
    %c0_i32_0 = arith.constant 0 : i32
    %c0_i32_1 = arith.constant 0 : i32
    return %c0_i32, %c0_i32_0 : i32, i32
  }
  func.func @transform_3(%arg0: i32) -> (i32, i32) {
    %c0_i32 = arith.constant 0 : i32
    %c0_i32_0 = arith.constant 0 : i32
    return %arg0, %c0_i32 : i32, i32
  }
}

</mosaic_0001>

<bundles_post_ra>
// kernel: tpu_custom_call.1
= control target key start
LH: loop header
LB: loop body
LE: loop exit
PB: predicated region body
PF: predicated region fallthrough
CT: control target
= control target key end

     0   :  { %8 = vsyncpa [#allocation3], 0  ;;  %s881_s0 = inlined_call_operand.hbm [shape: bf16[32,128], index: 0, kind: input, shape index: {}]   ;;  %s882_s1 = inlined_call_operand.hbm [shape: bf16[128,128], index: 1, kind: input, shape index: {}]   ;;  %s883_s2 = inlined_call_operand.vmem [shape: f32[1,128], index: 2, kind: input, shape index: {}]   ;;  %s884_s3 = inlined_call_operand.hbm [shape: f32[32,128], index: 3, kind: output, shape index: {}]  }
   0x1   :  { %10 = vsyncpa [#allocation3 + $0x1], 0 }
   0x2   :  { %11 = vsyncpa [#allocation6], 0 }
   0x3   :  { %12 = vsyncpa [#allocation4], 0 }
   0x4   :  { %14 = vsyncpa [#allocation4 + $0x1], 0  ;;  %s687_s12 = smov 0   ;;  %s689_s13 = smov 0  }
   0x5   :  { %s691_s14 = smov 0   ;;  %s693_s15 = smov 0  }
   0x6 LB: > { %s708_s16 = sadd.s32 4294967295, %s658_s15   ;;  %s409_s17 = sadd.s32 4294967294, %s658_s15   ;;  %s658_s15 = sphi %s693_s15, %s903_s15   ;;  %s654_s14 = sphi %s691_s14, %s902_s14   ;;  %s650_s13 = sphi %s689_s13, %s901_s13   ;;  %s646_s12 = sphi %s687_s12, %s900_s12  }
   0x7   : > { %p40_p0 = scmp.ne.s32.totalorder %s650_s13, %s646_s12  ;;  %p885_p1 = scmp.eq.s32.totalorder %s708_s16, 0 }
   0x8   : > { %p112_p3 = scmp.eq.s32.totalorder %s409_s17, 3  ;;  %p410_p5 = scmp.ge.s32.totalorder %s658_s15, 1 }
   0x9   : > { %p717_p4 = por %p885_p1, %p40_p0  ;;  %p119_p7 = scmp.lt.s32.totalorder %s658_s15, 5 }
   0xa   : > { %p722_p6 = por %p112_p3, %p40_p0  ;;  %s660_s21 = smov [#allocation5]  }
   0xb   : > { %s888_s18 = scalar_select %p717_p4, 1, 0 }
   0xc   : > { %s889_s19 = scalar_select %p722_p6, 1, 0 }
   0xd   : > { %p727_p8 = pnand %p410_p5, %p119_p7  ;;  %s131_s22 = sshll.u32 %s660_s21, 4  ;;  %s132_s22 = int_to_ptr.vmem [resolvable:$true] %s131_s22 }
   0xe   : > { %s740_s24 = sadd.s32 1, %s658_s15   ;;  %s27_s25 = sadd.s32 1, %s654_s14 }
   0xf   : > { %s890_s20 = scalar_select %p727_p8, 1, 0 }
  0x10   : > { %p469_p9 = pneg %p727_p8  ;;  %s24_s26 = ssub.s32 %s658_s15, %s740_s24 }
  0x11   : > { %s530_s29 = scalar_lea.hbm %s882_s1, 1024 }
  0x12   : > { %p735_p10 = pnand %p469_p9, %p885_p1  ;;  %p531_p11 = scmp.ne.s32.totalorder %s882_s1, %s530_s29 }
  0x13   : > { %p537_p3 = scmp.lt.u32.totalorder %s530_s29, %s882_s1 }
  0x14   : > { %p532_p12 = pneg %p735_p10 }
  0x16   : > { %p533_p13 = pnand %p532_p12, %p531_p11 }
  0x18   : > { %p534_p0 = pneg %p533_p13 }
  0x1a   : > { %p539_p5 = pnand %p537_p3, %p534_p0 }
  0x1c   : > { %542 = shalt.err (!%p539_p5)
}
  0x1d   : > { %s543_s7 = scalar_lea.vmem %s132_s22, 1024  ;;  %p551_p2 = scmp.lt.s32.totalorder %s132_s22, %s132_s22 }
  0x1e   : > { %p544_p7 = scmp.ne.s32.totalorder %s132_s22, %s543_s7  ;;  %p552_p6 = scmp.lt.s32.totalorder %s543_s7, %s543_s7 }
  0x20   : > { %p546_p9 = pnand %p544_p7, %p532_p12  ;;  %p553_p4 = por %p552_p6, %p551_p2 }
  0x22   : > { %p547_p1 = pneg %p546_p9 }
  0x24   : > { %p554_p8 = pnand %p553_p4, %p547_p1 }
  0x26   : > { %557 = shalt.err (!%p554_p8)
}
  0x27   : > { %s661_s8 = smov 64   ;;  %s662_s9 = smov 4  }
  0x28   : > { %472 = dma.hbm_to_vmem [thread:$0]  (!%p735_p10), %s882_s1, 1024, %s132_s22, [#allocation6], %s661_s8, %s661_s8, %s662_s9  }
  0x29   : > { %p25_p11 = scmp.eq.s32.totalorder %s24_s26, 0  ;;  %p34_p2 = scmp.ne.s32.totalorder %s654_s14, %s650_s13 }
  0x2a   : > { %p35_p1 = scmp.eq.s32.totalorder %s658_s15, 0  ;;  %p482_p4 = scmp.lt.s32.totalorder %s658_s15, 4 }
  0x2b   : > { %s766_s17 = scalar_select %p25_p11, %s654_s14, %s27_s25  }
  0x2c   : > { %p36_p6 = por %p35_p1, %p34_p2  ;;  %p892_p8 = scmp.eq.s32.totalorder %s708_s16, 3 }
  0x2d   : > { %s148_s27 = sand.u32 1, %s654_s14   ;;  %s414_s28 = sshll.u32 %s658_s15, 6 }
  0x2e   : > { %p770_p12 = por %p892_p8, %p34_p2  ;;  %s413_s29 = sshll.u32 %s148_s27, 2 }
  0x2f   : > { %s779_s4 = scalar_lea.hbm %s881_s0, %s414_s28  ;;  %s152_s22 = scalar_lea.vmem [#allocation2], %s413_s29 }
  0x30   : > { %s159_s25 = sshll.u32 %s152_s22, 4  ;;  %p781_p10 = pnand %p482_p4, %p36_p6  ;;  %s785_s25 = int_to_ptr.vmem [resolvable:$true] %s159_s25 }
  0x31   : > { %s149_s5 = scalar_lea.sflag [#allocation3], %s148_s27  ;;  %s558_s6 = scalar_lea.hbm %s779_s4, 64 }
  0x32   : > { %p559_p13 = scmp.ne.s32.totalorder %s779_s4, %s558_s6  ;;  %p560_p0 = pneg %p781_p10 }
  0x33   : > { %s563_s9 = scalar_lea.hbm %s881_s0, 256  ;;  %p564_p7 = scmp.lt.u32.totalorder %s779_s4, %s881_s0 }
  0x34   : > { %p561_p3 = pnand %p560_p0, %p559_p13  ;;  %p565_p9 = scmp.lt.u32.totalorder %s563_s9, %s558_s6 }
  0x35   : > { %p567_p2 = scmp.lt.u32.totalorder %s558_s6, %s779_s4 }
  0x36   : > { %p562_p5 = pneg %p561_p3  ;;  %p566_p11 = por %p565_p9, %p564_p7 }
  0x38   : > { %p568_p1 = por %p567_p2, %p566_p11 }
  0x3a   : > { %p569_p4 = pnand %p568_p1, %p562_p5 }
  0x3c   : > { %572 = shalt.err (!%p569_p4)
}
  0x3d   : > { %s573_s27 = scalar_lea.vmem %s785_s25, 64  ;;  %s663_s28 = smov [#allocation2]  }
  0x3e   : > { %p574_p6 = scmp.ne.s32.totalorder %s785_s25, %s573_s27  ;;  %s578_s29 = sshll.u32 %s663_s28, 4  ;;  %s579_s29 = int_to_ptr.vmem [resolvable:$false] %s578_s29 }
  0x3f   : > { %s580_s23 = scalar_lea.vmem %s579_s29, 128  ;;  %p581_p3 = scmp.lt.s32.totalorder %s785_s25, %s579_s29 }
  0x40   : > { %p576_p8 = pnand %p574_p6, %p560_p0  ;;  %p582_p7 = scmp.lt.s32.totalorder %s580_s23, %s573_s27 }
  0x42   : > { %p577_p13 = pneg %p576_p8  ;;  %p583_p9 = por %p582_p7, %p581_p3 }
  0x44   : > { %p584_p11 = pnand %p583_p9, %p577_p13 }
  0x46   : > { %587 = shalt.err (!%p584_p11)
}
  0x47   : > { %476 = dma.hbm_to_vmem [thread:$0]  (!%p781_p10), %s779_s4, 64, %s785_s25, %s149_s5  }
  0x48   : > { %p895_p5 = scmp.ne.s32.totalorder %s890_s20, 0 }
  0x49   : > { %s815_s30 = sand.u32 (!%p895_p5), 1, %s650_s13   ;;  %p896_p0 = scmp.ne.s32.totalorder (!%p895_p5), %s888_s18, 0 }
  0x4a   : > { %168 = sbr.rel (%p895_p5) target bundleno = 346 (0x15a), region = 32  ;;  %s416_s22 = sshll.u32 (!%p895_p5), %s815_s30, 2 }
  0x4b   : > { %s171_s6 = scalar_lea.sflag (!%p895_p5), [#allocation3], %s815_s30  ;;  %s819_s7 = scalar_lea.vmem (!%p895_p5), [#allocation2], %s416_s22 }
  0x51   : > { %633 = dma.done.wait (%p896_p0), %s171_s6, 64  }
  0x52   : > { %635 = vsyncadd (%p896_p0), %s171_s6, 4294967232  ;;  %p897_p10 = scmp.eq.s32.totalorder %s708_s16, 0 }
  0x54   : > { %637 = dma.done.wait (%p897_p10), [#allocation6], 1024   ;;  %p898_p2 = pmov %p897_p10 }
  0x55   : > { %v664_v0 = vmov 0.0   ;;  %vm665_vm0 = vmmov 0   ;;  %v522_v1 = vld [vmem:[#allocation5] sm:$0xff]   ;;  %v523_v2 = vld [vmem:[#allocation5 + $0x8] sm:$0xff]   ;;  %v524_v3 = vld [vmem:[#allocation5 + $0x10] sm:$0xff]   ;;  %s418_s18 = sshll.u32 %s815_s30, 3 }
  0x56   : > { %639 = vsyncadd (%p898_p2), [#allocation6], 4294966272  ;;  %441 = vmatprep.subr.bf16.mxu0 %v664_v0  ;;  %457 = vmatprep.mubr.msk.bf16.mxu0 %vm665_vm0, %v664_v0  ;;  %v525_v4 = vld [vmem:[#allocation5 + $0x18] sm:$0xff]   ;;  %v526_v5 = vld [vmem:[#allocation5 + $0x20] sm:$0xff]   ;;  %s429_s25 = sshll.u32 %s708_s16, 7  ;;  %s200_s26 = scalar_lea.vmem [#allocation7], %s418_s18 }
  0x57   : > { %442 = vmatpush3.bf16.msra.mxu0 %v522_v1  ;;  %v527_v6 = vld [vmem:[#allocation5 + $0x28] sm:$0xff]   ;;  %v528_v7 = vld [vmem:[#allocation5 + $0x30] sm:$0xff]   ;;  %v529_v8 = vld [vmem:[#allocation5 + $0x38] sm:$0xff]   ;;  %s329_s5 = sshll.u32 %s200_s26, 4  ;;  %s838_s10 = scalar_lea.hbm %s884_s3, %s429_s25  ;;  %s840_s5 = int_to_ptr.vmem [resolvable:$true] %s329_s5 }
  0x58   : > { %443 = vmatprep.subr.bf16.mxu0 %v664_v0  ;;  %v202_v9 = vld [vmem:[%s819_s7] sm:$0xf]  ;;  %s316_s11 = scalar_lea.sflag [#allocation4], %s815_s30  ;;  %s588_s16 = scalar_lea.vmem %s840_s5, 128 }
  0x59   : > { %v419_v10 = vld [vmem:[%s883_s2] ss:$0 sm:$0xff]  ;;  %p589_p1 = scmp.ne.s32.totalorder %s840_s5, %s588_s16  ;;  %s666_s27 = smov [#allocation7]  }
  0x5a   : > { %s592_s28 = sshll.u32 %s666_s27, 4  ;;  %s593_s28 = int_to_ptr.vmem [resolvable:$false] %s592_s28 }
  0x5b   : > { %444 = vmatpush3.bf16.msra.mxu0 %v523_v2  ;;  %p590_p4 = pnand %p589_p1, %p770_p12  ;;  %s594_s29 = scalar_lea.vmem %s593_s28, 256 }
  0x5c   : > { %445 = vmatprep.subr.bf16.mxu0 %v664_v0  ;;  %p595_p8 = scmp.lt.s32.totalorder %s840_s5, %s593_s28  ;;  %p596_p13 = scmp.lt.s32.totalorder %s594_s29, %s588_s16 }
  0x5d   : > { %p591_p6 = pneg %p590_p4 }
  0x5e   : > { %p597_p3 = por %p596_p13, %p595_p8 }
  0x5f   : > { %446 = vmatpush3.bf16.msra.mxu0 %v524_v3 }
  0x60   : > { %447 = vmatprep.subr.bf16.mxu0 %v664_v0  ;;  %p598_p7 = pnand %p597_p3, %p591_p6 }
  0x63   : > { %448 = vmatpush3.bf16.msra.mxu0 %v525_v4 }
  0x64   : > { %449 = vmatprep.subr.bf16.mxu0 %v664_v0 }
  0x67   : > { %450 = vmatpush3.bf16.msra.mxu0 %v526_v5 }
  0x68   : > { %451 = vmatprep.subr.bf16.mxu0 %v664_v0 }
  0x6b   : > { %452 = vmatpush3.bf16.msra.mxu0 %v527_v6 }
  0x6c   : > { %453 = vmatprep.subr.bf16.mxu0 %v664_v0 }
  0x6f   : > { %454 = vmatpush3.bf16.msra.mxu0 %v528_v7 }
  0x70   : > { %455 = vmatprep.subr.bf16.mxu0 %v664_v0 }
  0x73   : > { %456 = vmatpush3.bf16.msra.mxu0 %v529_v8 }
  0x76   : > { %458 = vmatmul.mubr.bf16.vlgmr.msra.gmra.mrb[0].mxu0 %v202_v9 }
 0x149   : > { %v308_v11 = vpop.f32.mrb[0].mxu0 }
 0x14a   : > { %v309_v12 = vadd.f32 %v419_v10, %v308_v11  ;;  %v459_v13 = vpop.f32.mrb[1].mxu0 }
 0x14b   : > { %v311_v14 = vpop.f32.mrb[2].mxu0 }
 0x14c   : > { %314 = vst [vmem:[%s200_s26] sm:$0xff] %v309_v12  ;;  %v460_v15 = vpop.f32.mrb[3].mxu0 }
 0x14d   : > { %601 = shalt.err (!%p598_p7)
}
 0x14e   : > { %s602_s23 = scalar_lea.hbm %s838_s10, 128  ;;  %s606_s6 = scalar_lea.hbm %s884_s3, 512 }
 0x14f   : > { %p603_p9 = scmp.ne.s32.totalorder %s838_s10, %s602_s23  ;;  %p607_p0 = scmp.lt.u32.totalorder %s838_s10, %s884_s3 }
 0x150   : > { %p608_p10 = scmp.lt.u32.totalorder %s606_s6, %s602_s23  ;;  %p610_p1 = scmp.lt.u32.totalorder %s602_s23, %s838_s10 }
 0x151   : > { %p604_p11 = pnand %p603_p9, %p770_p12 }
 0x152   : > { %p609_p2 = por %p608_p10, %p607_p0 }
 0x153   : > { %p605_p5 = pneg %p604_p11 }
 0x154   : > { %p611_p4 = por %p610_p1, %p609_p2 }
 0x156   : > { %p612_p6 = pnand %p611_p4, %p605_p5 }
 0x158   : > { %615 = shalt.err (!%p612_p6)
}
 0x159   : > { %467 = dma.vmem_to_hbm [thread:$0]  (%p770_p12), %s840_s5, 128, %s838_s10, %s316_s11  }
 0x15a PF: > { %p484_p8 = scmp.ge.s32.totalorder %s658_s15, 2  ;;  %s341_s20 = sand.u32 1, %s646_s12  }
 0x15b   : > { %p899_p13 = scmp.ne.s32.totalorder %s889_s19, 0  ;;  %s342_s4 = scalar_lea.sflag [#allocation4], %s341_s20 }
 0x15d   : > { %p478_p3 = pnand %p484_p8, %p899_p13 }
 0x15f   : > { %641 = dma.done.wait (!%p478_p3), %s342_s4, 128  }
 0x160   : > { %643 = vsyncadd (!%p478_p3), %s342_s4, 4294967168  ;;  %p17_p7 = scmp.ge.s32.totalorder %s740_s24, 6   ;;  %s900_s12 = smov %s650_s13 }
 0x161   : > { %s901_s13 = smov %s654_s14  ;;  %s902_s14 = smov %s766_s17 }
 0x162   : > { %s903_s15 = smov %s740_s24  ;;  %19 = sbr.rel (!%p17_p7) target bundleno = 6 (0x6), region = 81 }
 0x169   :  { %347 = vsyncpa [#allocation3], 1 }
 0x16a   :  { %349 = vsyncpa [#allocation3 + $0x1], 1 }
 0x16b   :  { %350 = vsyncpa [#allocation6], 1 }
 0x16c   :  { %351 = vsyncpa [#allocation4], 1 }
 0x16d   :  { %353 = vsyncpa [#allocation4 + $0x1], 1 }

</bundles_post_ra>
